<compile_context>
chip_gen: v7x
topology: tpu7x:2x2x1
jax: 0.10.0
libtpu: 0.0.40
codegen_flags: <defaults>
</compile_context>

<pallas_src>
import functools

import jax
import jax.numpy as jnp
from jax.experimental import pallas as pl
from jax.experimental.pallas import tpu as pltpu

LANES = 128   # TPU vreg lane width; equals 4*units for units=32.
D1 = 32       # dense head hidden width (fixed by the module architecture)


def _round_up(n, m):
    return ((n + m - 1) // m) * m


def _slab_layout(units):
    """Row offsets of each block inside the packed (rows, 128) slab.

    16-row alignment so every static slice starts on a packed-sublane boundary
    for BOTH f32 and bf16 slabs.
    """
    H = units
    win = 0
    whh = _round_up(win + 4, 16)     # 16
    w1 = _round_up(whh + H, 16)      # 48
    w2 = _round_up(w1 + H, 16)       # 80
    w3 = _round_up(w2 + D1, 16)      # 112
    misc = _round_up(w3 + D1, 16)    # 144
    total = _round_up(misc + 8, 16)  # 160
    return dict(win=win, whh=whh, w1=w1, w2=w2, w3=w3, misc=misc, total=total)


def build_param_slab(params, x_min, x_max, units, dtype=jnp.float32):
    """Fold normalization + sigmoid->tanh rescaling into the weights and pack
    everything into ONE lane-dense (rows, 128) slab (single DMA per call)."""
    H = units
    G = 4 * H
    assert G == LANES, "packing assumes 4*units == 128 (one full lane width)"
    lay = _slab_layout(units)

    xmin = x_min.reshape(4).astype(jnp.float32)
    xmax = x_max.reshape(4).astype(jnp.float32)
    # 2*(x-xmin)/(xmax-xmin)-1  ==  x*a + b  -> folded into W_in / b_in.
    a = 2.0 / (xmax - xmin)
    bvec = -(xmax + xmin) / (xmax - xmin)

    w_ih_t = params["w_ih"].T                      # (4, 4H)
    w_hh_t = params["w_hh"].T                      # (H, 4H)
    b_lstm = params["b_ih"] + params["b_hh"]       # (4H,)

    w_in = w_ih_t * a[:, None]                     # normalization folded in
    b_in = b_lstm + bvec @ w_ih_t

    # sigmoid(z) == 0.5*tanh(z/2)+0.5 : pre-halve the i/f/o gate columns so a
    # single full-width tanh in the kernel yields all four gate nonlinearities.
    col_scale = jnp.concatenate([
        jnp.full((H,), 0.5, jnp.float32),   # i
        jnp.full((H,), 0.5, jnp.float32),   # f
        jnp.ones((H,), jnp.float32),        # g (stays tanh)
        jnp.full((H,), 0.5, jnp.float32),   # o
    ])
    w_in = w_in * col_scale[None, :]
    w_hh = w_hh_t * col_scale[None, :]
    b_in = b_in * col_scale

    # Dense head: pad only the OUTPUT lanes to 128; contraction dims stay 32.
    w1p = jnp.zeros((H, LANES), jnp.float32).at[:, :D1].set(params["w1"].T)
    w2p = jnp.zeros((D1, LANES), jnp.float32).at[:, :D1].set(params["w2"].T)
    w3p = jnp.zeros((D1, LANES), jnp.float32).at[:, :2].set(params["w3"].T)

    # Denormalization  (d+1)/2*(max2-min2)+min2  ==  d*s + o.
    s2 = (xmax[:2] - xmin[:2]) * 0.5
    o2 = (xmax[:2] + xmin[:2]) * 0.5

    misc = jnp.zeros((8, LANES), jnp.float32)
    misc = misc.at[0, :G].set(b_in)
    misc = misc.at[1, :D1].set(params["b1"])
    misc = misc.at[2, :D1].set(params["b2"])
    misc = misc.at[3, :2].set(params["b3"])
    misc = misc.at[4, :2].set(s2)
    misc = misc.at[5, :2].set(o2)

    slab = jnp.zeros((lay["total"], LANES), jnp.float32)
    slab = slab.at[lay["win"]:lay["win"] + 4, :].set(w_in)
    slab = slab.at[lay["whh"]:lay["whh"] + H, :].set(w_hh)
    slab = slab.at[lay["w1"]:lay["w1"] + H, :].set(w1p)
    slab = slab.at[lay["w2"]:lay["w2"] + D1, :].set(w2p)
    slab = slab.at[lay["w3"]:lay["w3"] + D1, :].set(w3p)
    slab = slab.at[lay["misc"]:lay["misc"] + 8, :].set(misc)
    return slab.astype(dtype)   # single rounding of the folded weights


def mymodel_kernel(x_ref, w_ref, out_ref, *, batch, seq_len, units, lay):
    """One batch tile: (folded) normalize -> LSTM unroll -> MLP -> denorm."""
    H, B, T = units, batch, seq_len
    f32 = jnp.float32
    wdt = w_ref.dtype          # f32 or bf16 slab; accumulation is always f32

    w_in = w_ref[lay["win"]:lay["win"] + 4, :]            # (4, 128)
    w_hh = w_ref[lay["whh"]:lay["whh"] + H, :]            # (H, 128)
    w1 = w_ref[lay["w1"]:lay["w1"] + H, :]                # (H, 128)
    w2 = w_ref[lay["w2"]:lay["w2"] + D1, :]               # (32, 128)
    w3 = w_ref[lay["w3"]:lay["w3"] + D1, :]               # (32, 128)
    misc = w_ref[lay["misc"]:lay["misc"] + 8, :].astype(f32)
    b_in, b1, b2, b3 = misc[0:1, :], misc[1:2, :], misc[2:3, :], misc[3:4, :]
    d_scale, d_off = misc[4:5, :], misc[5:6, :]

    # Hoisted input projection for ALL timesteps of this tile in one matmul
    # (input normalization already folded into w_in / b_in by the wrapper).
    x = x_ref[...].astype(wdt)                            # (T*B, 4), time-major
    x_proj = jnp.dot(x, w_in, preferred_element_type=f32) + b_in   # (T*B, 128)

    h = jnp.zeros((B, H), f32)
    c = jnp.zeros((B, H), f32)
    # T is tiny (3): full trace-time unroll.  For large T, stage w_hh once
    # with pltpu.matmul_push_rhs + matmul_acc_lhs to avoid re-pushing weights
    # on the serial h-dependency chain.
    for t in range(T):
        pre = x_proj[t * B:(t + 1) * B, :] + jnp.dot(
            h.astype(wdt), w_hh, preferred_element_type=f32)       # (B, 128)
        th = jnp.tanh(pre)      # ONE full-width EUP pass covers all 4 gates
        sig = 0.5 * th + 0.5    # = sigmoid(orig pre) for the pre-halved cols
        i_g = sig[:, 0 * H:1 * H]
        f_g = sig[:, 1 * H:2 * H]
        g_g = th[:, 2 * H:3 * H]
        o_g = sig[:, 3 * H:4 * H]
        c = f_g * c + i_g * g_g
        h = o_g * jnp.tanh(c)

    # MLP head: contract only the 32 real lanes (w2/w3 pad output lanes only).
    d1 = jnp.tanh(jnp.dot(h.astype(wdt), w1, preferred_element_type=f32) + b1)
    d2 = jnp.tanh(jnp.dot(d1[:, :D1].astype(wdt), w2,
                          preferred_element_type=f32) + b2)
    dense = jnp.dot(d2[:, :D1].astype(wdt), w3,
                    preferred_element_type=f32) + b3               # (B, 128)

    # Denormalization folded to one FMA; store only the 2 real output lanes.
    out_ref[...] = (dense * d_scale + d_off)[:, :2]


def mymodel_forward(inputs, slab, *, units, block_batch=128):
    """Wrapper: batch tiling + per-tile time-major layout + grid launch."""
    B, T, F = inputs.shape
    assert F == 4
    lay = _slab_layout(units)
    assert slab.shape == (lay["total"], LANES)

    # Batch tile: sublane-aligned (multiple of 8); pad B up to a whole number
    # of tiles.  Padded rows compute garbage that is sliced off below.
    bt = min(block_batch, _round_up(B, 8))
    bt = max(8, _round_up(bt, 8))
    Bp = _round_up(B, bt)
    nb = Bp // bt

    x = inputs.astype(jnp.float32)
    if Bp != B:
        x = jnp.pad(x, ((0, Bp - B), (0, 0), (0, 0)))
    # Per-tile time-major layout: tile i occupies rows [i*T*bt, (i+1)*T*bt),
    # ordered (t, b) inside the tile so each timestep is bt contiguous rows.
    x_tiled = x.reshape(nb, bt, T, F).transpose(0, 2, 1, 3).reshape(nb * T * bt, F)

    kernel = functools.partial(mymodel_kernel, batch=bt, seq_len=T,
                               units=units, lay=lay)

    out = pl.pallas_call(
        kernel,
        out_shape=jax.ShapeDtypeStruct((Bp, 2), jnp.float32),
        grid_spec=pltpu.PrefetchScalarGridSpec(
            num_scalar_prefetch=0,
            grid=(nb,),
            in_specs=[
                pl.BlockSpec((T * bt, F), lambda i: (i, 0)),
                # Constant block index -> the slab is DMA'd only once per call.
                pl.BlockSpec((lay["total"], LANES), lambda i: (0, 0)),
            ],
            out_specs=pl.BlockSpec((bt, 2), lambda i: (i, 0)),
        ),
        compiler_params=pltpu.CompilerParams(
            dimension_semantics=("parallel",)),   # both TCs on v7x
    )(x_tiled, slab)

    # (B, 2) broadcast against the (1,1,2) min/max constants -> (1, B, 2),
    # exactly as in the PyTorch forward.
    return out[:B][None, :, :]


def mymodel_reference(inputs, x_min, x_max, params, *, units):
    """Pure-JAX reference mirroring PyTorch semantics, for correctness check."""
    rnn_in = 2.0 * (inputs - x_min) / (x_max - x_min) - 1.0
    B, T, _ = inputs.shape
    H = units
    h = jnp.zeros((B, H), jnp.float32)
    c = jnp.zeros((B, H), jnp.float32)
    for t in range(T):
        gates = (rnn_in[:, t, :] @ params["w_ih"].T + params["b_ih"]
                 + h @ params["w_hh"].T + params["b_hh"])
        i_g = jax.nn.sigmoid(gates[:, 0 * H:1 * H])
        f_g = jax.nn.sigmoid(gates[:, 1 * H:2 * H])
        g_g = jnp.tanh(gates[:, 2 * H:3 * H])
        o_g = jax.nn.sigmoid(gates[:, 3 * H:4 * H])
        c = f_g * c + i_g * g_g
        h = o_g * jnp.tanh(c)
    d = jnp.tanh(h @ params["w1"].T + params["b1"])
    d = jnp.tanh(d @ params["w2"].T + params["b2"])
    dense_out = d @ params["w3"].T + params["b3"]
    return (dense_out + 1.0) / 2.0 * (x_max[:, :, :2] - x_min[:, :, :2]) + x_min[:, :, :2]


def init_params(key, units):
    """Deterministic init matching PyTorch parameter shapes."""
    ks = jax.random.split(key, 10)
    kl = 1.0 / jnp.sqrt(jnp.float32(units))

    def u(k, shape, bound):
        return jax.random.uniform(k, shape, jnp.float32, -bound, bound)

    return {
        "w_ih": u(ks[0], (4 * units, 4), kl),
        "w_hh": u(ks[1], (4 * units, units), kl),
        "b_ih": u(ks[2], (4 * units,), kl),
        "b_hh": u(ks[3], (4 * units,), kl),
        "w1": u(ks[4], (D1, units), 1.0 / jnp.sqrt(jnp.float32(units))),
        "b1": u(ks[5], (D1,), 1.0 / jnp.sqrt(jnp.float32(units))),
        "w2": u(ks[6], (D1, D1), 1.0 / jnp.sqrt(32.0)),
        "b2": u(ks[7], (D1,), 1.0 / jnp.sqrt(32.0)),
        "w3": u(ks[8], (2, D1), 1.0 / jnp.sqrt(32.0)),
        "b3": u(ks[9], (2,), 1.0 / jnp.sqrt(32.0)),
    }


# TODO(synk): train_model / test_model (optimizer loop, scipy interpolation,
# autoregressive host loop) are host-side control code, not part of forward.

if __name__ == "__main__":
    units = 32             # LSTM hidden size
    B, T, F = 13, 3, 4     # batch (non-multiple of tile -> exercises padding),
                           # sequence length (test_model uses 3), features

    key = jax.random.PRNGKey(0)
    k_params, k_x = jax.random.split(key)
    params = init_params(k_params, units)

    # Normalization bounds, shape (1, 1, 4) as in the PyTorch module.
    x_min = jnp.array([[[0.0, 40.0, 0.2, 0.0]]], dtype=jnp.float32)
    x_max = jnp.array([[[12.0, 80.0, 1.0, 1.0]]], dtype=jnp.float32)

    # Inputs drawn inside [x_min, x_max].
    frac = jax.random.uniform(k_x, (B, T, F), jnp.float32)
    inputs = x_min + frac * (x_max - x_min)

    ref = mymodel_reference(inputs, x_min, x_max, params, units=units)

    # f32 slab: bit-faithful to the PyTorch forward (tight tolerance).
    # block_batch=8 -> 2 batch tiles -> exercises the parallel grid.
    slab32 = build_param_slab(params, x_min, x_max, units, dtype=jnp.float32)
    out32 = jax.block_until_ready(
        mymodel_forward(inputs, slab32, units=units, block_batch=8))
    assert out32.shape == (1, B, 2), out32.shape
    assert jnp.allclose(out32, ref, atol=1e-3, rtol=1e-4), (out32, ref)

    # bf16 slab (per perf review): half the parameter DMA bytes + bf16-native
    # MXU passes.  Validated to within 2% of each channel's physical range
    # (bf16 weight quantization shifts the denormalized outputs slightly).
    slab16 = build_param_slab(params, x_min, x_max, units, dtype=jnp.bfloat16)
    out16 = jax.block_until_ready(
        mymodel_forward(inputs, slab16, units=units, block_batch=8))
    assert out16.shape == (1, B, 2), out16.shape
    chan_range = (x_max - x_min)[0, 0, :2]
    norm_err = jnp.max(jnp.abs(out16 - ref) / chan_range)
    assert norm_err < 2e-2, norm_err

    print("KERNEL_OK")
</pallas_src>

<mosaic_0001>
module attributes {stable_mosaic.version = 11 : i64} {
  func.func @mymodel_kernel(%arg0: i32, %arg1: memref<24x4xf32, #tpu.memory_space<vmem>>, %arg2: memref<160x128xf32, #tpu.memory_space<vmem>>, %arg3: memref<8x2xf32, #tpu.memory_space<vmem>>) attributes {dimension_semantics = [#tpu.dimension_semantics<parallel>], iteration_bounds = array<i64: 2>, scalar_prefetch = 0 : i64, scratch_operands = 0 : i64, tpu.core_type = #tpu.core_type<tc>, window_params = [{transform_indices = @transform_0, window_bounds = array<i64: 24, 4>}, {pipeline_mode = #tpu.pipeline_mode<synchronous>, transform_indices = @transform_1, window_bounds = array<i64: 160, 128>}, {transform_indices = @transform_2, window_bounds = array<i64: 8, 2>}]} {
    %c0 = arith.constant 0 : index
    %c0_0 = arith.constant 0 : index
    %0 = vector.load %arg2[%c0, %c0_0] : memref<160x128xf32, #tpu.memory_space<vmem>>, vector<4x128xf32>
    %c16 = arith.constant 16 : index
    %c0_1 = arith.constant 0 : index
    %1 = vector.load %arg2[%c16, %c0_1] : memref<160x128xf32, #tpu.memory_space<vmem>>, vector<32x128xf32>
    %c48 = arith.constant 48 : index
    %c0_2 = arith.constant 0 : index
    %2 = vector.load %arg2[%c48, %c0_2] : memref<160x128xf32, #tpu.memory_space<vmem>>, vector<32x128xf32>
    %c80 = arith.constant 80 : index
    %c0_3 = arith.constant 0 : index
    %3 = vector.load %arg2[%c80, %c0_3] : memref<160x128xf32, #tpu.memory_space<vmem>>, vector<32x128xf32>
    %c112 = arith.constant 112 : index
    %c0_4 = arith.constant 0 : index
    %4 = vector.load %arg2[%c112, %c0_4] : memref<160x128xf32, #tpu.memory_space<vmem>>, vector<32x128xf32>
    %c144 = arith.constant 144 : index
    %c0_5 = arith.constant 0 : index
    %5 = vector.load %arg2[%c144, %c0_5] : memref<160x128xf32, #tpu.memory_space<vmem>>, vector<8x128xf32>
    %6 = vector.extract_strided_slice %5 {offsets = [0, 0], sizes = [1, 128], strides = [1, 1]} : vector<8x128xf32> to vector<1x128xf32>
    %7 = vector.extract_strided_slice %5 {offsets = [1, 0], sizes = [1, 128], strides = [1, 1]} : vector<8x128xf32> to vector<1x128xf32>
    %8 = vector.extract_strided_slice %5 {offsets = [2, 0], sizes = [1, 128], strides = [1, 1]} : vector<8x128xf32> to vector<1x128xf32>
    %9 = vector.extract_strided_slice %5 {offsets = [3, 0], sizes = [1, 128], strides = [1, 1]} : vector<8x128xf32> to vector<1x128xf32>
    %10 = vector.extract_strided_slice %5 {offsets = [4, 0], sizes = [1, 128], strides = [1, 1]} : vector<8x128xf32> to vector<1x128xf32>
    %11 = vector.extract_strided_slice %5 {offsets = [5, 0], sizes = [1, 128], strides = [1, 1]} : vector<8x128xf32> to vector<1x128xf32>
    %c0_6 = arith.constant 0 : index
    %c0_7 = arith.constant 0 : index
    %12 = vector.load %arg1[%c0_6, %c0_7] : memref<24x4xf32, #tpu.memory_space<vmem>>, vector<24x4xf32>
    %cst = arith.constant dense<0.000000e+00> : vector<24x128xf32>
    %13 = tpu.matmul %12, %0, %cst {dimension_numbers = #tpu.dot_dimension_numbers<[1], [0], [0], [1], [0, 0, 1, 1], [], []>} : vector<24x4xf32>, vector<4x128xf32>, vector<24x128xf32> -> vector<24x128xf32>
    %14 = vector.broadcast %6 : vector<1x128xf32> to vector<24x128xf32>
    %15 = arith.addf %13, %14 : vector<24x128xf32>
    %cst_8 = arith.constant 0.000000e+00 : f32
    %16 = vector.broadcast %cst_8 : f32 to vector<8x32xf32>
    %cst_9 = arith.constant 0.000000e+00 : f32
    %17 = vector.broadcast %cst_9 : f32 to vector<8x32xf32>
    %18 = vector.extract_strided_slice %15 {offsets = [0, 0], sizes = [8, 128], strides = [1, 1]} : vector<24x128xf32> to vector<8x128xf32>
    %cst_10 = arith.constant dense<0.000000e+00> : vector<8x128xf32>
    %19 = tpu.matmul %16, %1, %cst_10 {dimension_numbers = #tpu.dot_dimension_numbers<[1], [0], [0], [1], [0, 0, 1, 1], [], []>} : vector<8x32xf32>, vector<32x128xf32>, vector<8x128xf32> -> vector<8x128xf32>
    %20 = arith.addf %18, %19 : vector<8x128xf32>
    %21 = math.tanh %20 : vector<8x128xf32>
    %cst_11 = arith.constant 5.000000e-01 : f32
    %22 = vector.broadcast %cst_11 : f32 to vector<8x128xf32>
    %23 = arith.mulf %22, %21 : vector<8x128xf32>
    %cst_12 = arith.constant 5.000000e-01 : f32
    %24 = vector.broadcast %cst_12 : f32 to vector<8x128xf32>
    %25 = arith.addf %23, %24 : vector<8x128xf32>
    %26 = vector.extract_strided_slice %25 {offsets = [0, 0], sizes = [8, 32], strides = [1, 1]} : vector<8x128xf32> to vector<8x32xf32>
    %27 = vector.extract_strided_slice %25 {offsets = [0, 32], sizes = [8, 32], strides = [1, 1]} : vector<8x128xf32> to vector<8x32xf32>
    %28 = vector.extract_strided_slice %21 {offsets = [0, 64], sizes = [8, 32], strides = [1, 1]} : vector<8x128xf32> to vector<8x32xf32>
    %29 = vector.extract_strided_slice %25 {offsets = [0, 96], sizes = [8, 32], strides = [1, 1]} : vector<8x128xf32> to vector<8x32xf32>
    %30 = arith.mulf %27, %17 : vector<8x32xf32>
    %31 = arith.mulf %26, %28 : vector<8x32xf32>
    %32 = arith.addf %30, %31 : vector<8x32xf32>
    %33 = math.tanh %32 : vector<8x32xf32>
    %34 = arith.mulf %29, %33 : vector<8x32xf32>
    %35 = vector.extract_strided_slice %15 {offsets = [8, 0], sizes = [8, 128], strides = [1, 1]} : vector<24x128xf32> to vector<8x128xf32>
    %cst_13 = arith.constant dense<0.000000e+00> : vector<8x128xf32>
    %36 = tpu.matmul %34, %1, %cst_13 {dimension_numbers = #tpu.dot_dimension_numbers<[1], [0], [0], [1], [0, 0, 1, 1], [], []>} : vector<8x32xf32>, vector<32x128xf32>, vector<8x128xf32> -> vector<8x128xf32>
    %37 = arith.addf %35, %36 : vector<8x128xf32>
    %38 = math.tanh %37 : vector<8x128xf32>
    %cst_14 = arith.constant 5.000000e-01 : f32
    %39 = vector.broadcast %cst_14 : f32 to vector<8x128xf32>
    %40 = arith.mulf %39, %38 : vector<8x128xf32>
    %cst_15 = arith.constant 5.000000e-01 : f32
    %41 = vector.broadcast %cst_15 : f32 to vector<8x128xf32>
    %42 = arith.addf %40, %41 : vector<8x128xf32>
    %43 = vector.extract_strided_slice %42 {offsets = [0, 0], sizes = [8, 32], strides = [1, 1]} : vector<8x128xf32> to vector<8x32xf32>
    %44 = vector.extract_strided_slice %42 {offsets = [0, 32], sizes = [8, 32], strides = [1, 1]} : vector<8x128xf32> to vector<8x32xf32>
    %45 = vector.extract_strided_slice %38 {offsets = [0, 64], sizes = [8, 32], strides = [1, 1]} : vector<8x128xf32> to vector<8x32xf32>
    %46 = vector.extract_strided_slice %42 {offsets = [0, 96], sizes = [8, 32], strides = [1, 1]} : vector<8x128xf32> to vector<8x32xf32>
    %47 = arith.mulf %44, %32 : vector<8x32xf32>
    %48 = arith.mulf %43, %45 : vector<8x32xf32>
    %49 = arith.addf %47, %48 : vector<8x32xf32>
    %50 = math.tanh %49 : vector<8x32xf32>
    %51 = arith.mulf %46, %50 : vector<8x32xf32>
    %52 = vector.extract_strided_slice %15 {offsets = [16, 0], sizes = [8, 128], strides = [1, 1]} : vector<24x128xf32> to vector<8x128xf32>
    %cst_16 = arith.constant dense<0.000000e+00> : vector<8x128xf32>
    %53 = tpu.matmul %51, %1, %cst_16 {dimension_numbers = #tpu.dot_dimension_numbers<[1], [0], [0], [1], [0, 0, 1, 1], [], []>} : vector<8x32xf32>, vector<32x128xf32>, vector<8x128xf32> -> vector<8x128xf32>
    %54 = arith.addf %52, %53 : vector<8x128xf32>
    %55 = math.tanh %54 : vector<8x128xf32>
    %cst_17 = arith.constant 5.000000e-01 : f32
    %56 = vector.broadcast %cst_17 : f32 to vector<8x128xf32>
    %57 = arith.mulf %56, %55 : vector<8x128xf32>
    %cst_18 = arith.constant 5.000000e-01 : f32
    %58 = vector.broadcast %cst_18 : f32 to vector<8x128xf32>
    %59 = arith.addf %57, %58 : vector<8x128xf32>
    %60 = vector.extract_strided_slice %59 {offsets = [0, 0], sizes = [8, 32], strides = [1, 1]} : vector<8x128xf32> to vector<8x32xf32>
    %61 = vector.extract_strided_slice %59 {offsets = [0, 32], sizes = [8, 32], strides = [1, 1]} : vector<8x128xf32> to vector<8x32xf32>
    %62 = vector.extract_strided_slice %55 {offsets = [0, 64], sizes = [8, 32], strides = [1, 1]} : vector<8x128xf32> to vector<8x32xf32>
    %63 = vector.extract_strided_slice %59 {offsets = [0, 96], sizes = [8, 32], strides = [1, 1]} : vector<8x128xf32> to vector<8x32xf32>
    %64 = arith.mulf %61, %49 : vector<8x32xf32>
    %65 = arith.mulf %60, %62 : vector<8x32xf32>
    %66 = arith.addf %64, %65 : vector<8x32xf32>
    %67 = math.tanh %66 : vector<8x32xf32>
    %68 = arith.mulf %63, %67 : vector<8x32xf32>
    %cst_19 = arith.constant dense<0.000000e+00> : vector<8x128xf32>
    %69 = tpu.matmul %68, %2, %cst_19 {dimension_numbers = #tpu.dot_dimension_numbers<[1], [0], [0], [1], [0, 0, 1, 1], [], []>} : vector<8x32xf32>, vector<32x128xf32>, vector<8x128xf32> -> vector<8x128xf32>
    %70 = vector.broadcast %7 : vector<1x128xf32> to vector<8x128xf32>
    %71 = arith.addf %69, %70 : vector<8x128xf32>
    %72 = math.tanh %71 : vector<8x128xf32>
    %73 = vector.extract_strided_slice %72 {offsets = [0, 0], sizes = [8, 32], strides = [1, 1]} : vector<8x128xf32> to vector<8x32xf32>
    %cst_20 = arith.constant dense<0.000000e+00> : vector<8x128xf32>
    %74 = tpu.matmul %73, %3, %cst_20 {dimension_numbers = #tpu.dot_dimension_numbers<[1], [0], [0], [1], [0, 0, 1, 1], [], []>} : vector<8x32xf32>, vector<32x128xf32>, vector<8x128xf32> -> vector<8x128xf32>
    %75 = vector.broadcast %8 : vector<1x128xf32> to vector<8x128xf32>
    %76 = arith.addf %74, %75 : vector<8x128xf32>
    %77 = math.tanh %76 : vector<8x128xf32>
    %78 = vector.extract_strided_slice %77 {offsets = [0, 0], sizes = [8, 32], strides = [1, 1]} : vector<8x128xf32> to vector<8x32xf32>
    %cst_21 = arith.constant dense<0.000000e+00> : vector<8x128xf32>
    %79 = tpu.matmul %78, %4, %cst_21 {dimension_numbers = #tpu.dot_dimension_numbers<[1], [0], [0], [1], [0, 0, 1, 1], [], []>} : vector<8x32xf32>, vector<32x128xf32>, vector<8x128xf32> -> vector<8x128xf32>
    %80 = vector.broadcast %9 : vector<1x128xf32> to vector<8x128xf32>
    %81 = arith.addf %79, %80 : vector<8x128xf32>
    %82 = vector.broadcast %10 : vector<1x128xf32> to vector<8x128xf32>
    %83 = arith.mulf %81, %82 : vector<8x128xf32>
    %84 = vector.broadcast %11 : vector<1x128xf32> to vector<8x128xf32>
    %85 = arith.addf %83, %84 : vector<8x128xf32>
    %86 = vector.extract_strided_slice %85 {offsets = [0, 0], sizes = [8, 2], strides = [1, 1]} : vector<8x128xf32> to vector<8x2xf32>
    %c0_22 = arith.constant 0 : index
    %c0_23 = arith.constant 0 : index
    %87 = vector.load %arg3[%c0_22, %c0_23] : memref<8x2xf32, #tpu.memory_space<vmem>>, vector<8x2xf32>
    tpu.vector_store %arg3[%c0_22, %c0_23], %86 {strides = array<i32>} : memref<8x2xf32, #tpu.memory_space<vmem>>, vector<8x2xf32>,
    return
  }
  func.func @transform_0(%arg0: i32) -> (i32, i32) {
    %c0_i32 = arith.constant 0 : i32
    %c0_i32_0 = arith.constant 0 : i32
    return %arg0, %c0_i32 : i32, i32
  }
  func.func @transform_1(%arg0: i32) -> (i32, i32) {
    %c0_i32 = arith.constant 0 : i32
    %c0_i32_0 = arith.constant 0 : i32
    %c0_i32_1 = arith.constant 0 : i32
    return %c0_i32, %c0_i32_0 : i32, i32
  }
  func.func @transform_2(%arg0: i32) -> (i32, i32) {
    %c0_i32 = arith.constant 0 : i32
    %c0_i32_0 = arith.constant 0 : i32
    return %arg0, %c0_i32 : i32, i32
  }
}

</mosaic_0001>

<bundles_post_ra>
// kernel: tpu_custom_call.1
= control target key start
LH: loop header
LB: loop body
LE: loop exit
PB: predicated region body
PF: predicated region fallthrough
CT: control target
= control target key end

     0   :  { %7 = vsyncpa [#allocation3], 0  ;;  %s1159_s9 = smov 0   ;;  %s1290_s0 = inlined_call_operand.vmem [shape: f32[48,4], index: 0, kind: input, shape index: {}]   ;;  %s1291_s1 = inlined_call_operand.hbm [shape: f32[160,128], index: 1, kind: input, shape index: {}]   ;;  %s1292_s2 = inlined_call_operand.vmem [shape: f32[16,2], index: 2, kind: output, shape index: {}]  }
   0x1 LB: > { %s1165_s10 = sadd.s32 4294967295, %s1134_s9   ;;  %p879_p0 = scmp.ge.s32.totalorder %s1134_s9, 1  ;;  %s1134_s9 = sphi %s1159_s9, %s13_s9  }
   0x2   : > { %p91_p1 = scmp.lt.s32.totalorder %s1134_s9, 3  ;;  %s1136_s11 = smov [#allocation2]  }
   0x3   : > { %s103_s12 = sshll.u32 %s1136_s11, 4  ;;  %p1293_p3 = scmp.eq.s32.totalorder %s1165_s10, 0  ;;  %s104_s12 = int_to_ptr.vmem [resolvable:$true] %s103_s12 }
   0x4   : > { %p1169_p2 = pnand %p879_p0, %p91_p1  ;;  %s1096_s17 = scalar_lea.hbm %s1291_s1, 2560 }
   0x5   : > { %p1097_p6 = scmp.ne.s32.totalorder %s1291_s1, %s1096_s17  ;;  %p1103_p10 = scmp.lt.u32.totalorder %s1096_s17, %s1291_s1 }
   0x6   : > { %s1295_s13 = scalar_select %p1169_p2, 1, 0 }
   0x7   : > { %p1058_p4 = pneg %p1169_p2 }
   0x9   : > { %p1178_p5 = pnand %p1293_p3, %p1058_p4 }
   0xb   : > { %p1098_p7 = pneg %p1178_p5 }
   0xd   : > { %p1099_p8 = pnand %p1098_p7, %p1097_p6 }
   0xf   : > { %p1100_p9 = pneg %p1099_p8 }
  0x11   : > { %p1105_p11 = pnand %p1103_p10, %p1100_p9 }
  0x13   : > { %1108 = shalt.err (!%p1105_p11)
}
  0x14   : > { %s1109_s22 = scalar_lea.vmem %s104_s12, 2560  ;;  %p1117_p1 = scmp.lt.s32.totalorder %s104_s12, %s104_s12 }
  0x15   : > { %p1110_p12 = scmp.ne.s32.totalorder %s104_s12, %s1109_s22  ;;  %p1118_p4 = scmp.lt.s32.totalorder %s1109_s22, %s1109_s22 }
  0x17   : > { %p1112_p13 = pnand %p1110_p12, %p1098_p7  ;;  %p1119_p3 = por %p1118_p4, %p1117_p1 }
  0x19   : > { %p1113_p0 = pneg %p1112_p13 }
  0x1b   : > { %p1120_p2 = pnand %p1119_p3, %p1113_p0 }
  0x1d   : > { %1123 = shalt.err (!%p1120_p2)
}
  0x1e   : > { %s1137_s23 = smov 128   ;;  %s1138_s24 = smov 8  }
  0x1f   : > { %1061 = dma.hbm_to_vmem [thread:$0]  (!%p1178_p5), %s1291_s1, 2560, %s104_s12, [#allocation3], %s1137_s23, %s1137_s23, %s1138_s24  }
  0x20   : > { %p1297_p6 = scmp.ne.s32.totalorder %s1295_s13, 0 }
  0x21   : > { %p1298_p8 = scmp.eq.s32.totalorder (!%p1297_p6), %s1165_s10, 0 }
  0x22   : > { %128 = sbr.rel (%p1297_p6) target bundleno = 2833 (0xb11), region = 28 }
  0x29   : > { %1129 = dma.done.wait (%p1298_p8), [#allocation3], 2560   ;;  %p1299_p7 = pmov %p1298_p8 }
  0x2a   : > { %s149_s27 = smul.u32 3, %s1165_s10  ;;  %v1139_v0 = vmov 0.0   ;;  %vm1140_vm0 = vmmov 0   ;;  %vm194_vm1 = vcmask 1043456   ;;  %vm184_vm2 = vcmask 31744   ;;  %v160_v2 = vld [vmem:[#allocation2 + $0x10] sm:$0xff] }
  0x2b   : > { %1131 = vsyncadd (%p1299_p7), [#allocation3], 4294964736  ;;  %931 = vmatprep.subr.mxu0 %v1139_v0  ;;  %933 = vmatprep.mubr.msk.f32.mxu0 %vm1140_vm0, %v1139_v0  ;;  %v159_v1 = vld [vmem:[#allocation2] sm:$0xf]  ;;  %v161_v3 = vld [vmem:[#allocation2 + $0x18] sm:$0xff]  ;;  %v1141_v7 = vmov 0.0|0.0   ;;  %v180_v11 = vlaneseq }
  0x2c   : > { %p150_p2 = scmp.lt.s32.totalorder %s149_s27, 5  ;;  %1044 = vmatprep.subr.mxu1 %v1139_v0  ;;  %939 = vmatprep.mubr.msk.f32.mxu1 %vm1140_vm0, %v1139_v0  ;;  %v1009_v5 = vpack.c.bf16 %v161_v3, %v160_v2  ;;  %v162_v6 = vld [vmem:[#allocation2 + $0x20] sm:$0xff]  ;;  %v163_v8 = vld [vmem:[#allocation2 + $0x28] sm:$0xff]  ;;  %v1236_v14 = vld [vmem:[#allocation2 + $0x90] sm:$0xff]  ;;  %s1142_s4 = smov 64   ;;  %vm278_vm3 = vcmask 261120  }
  0x2d   : > { %932 = vmatpush3.msk.msra.mxu0 %vm194_vm1, %v159_v1  ;;  %1045 = vmatpush3.msk.msra.mxu1 %vm194_vm1, %v159_v1  ;;  %v1012_v10 = vpack.c.bf16 %v163_v8, %v162_v6  ;;  %v1233_v12 = vshrl.u32 %v180_v11, 7  ;;  %s1143_s5 = smov 32   ;;  %v164_v61 = vld [vmem:[#allocation2 + $0x30] sm:$0xff]  ;;  %v165_v62 = vld [vmem:[#allocation2 + $0x38] sm:$0xff]  ;;  %v166_v63 = vld [vmem:[#allocation2 + $0x40] sm:$0xff]  ;;  %p155_p3 = scmp.lt.s32.totalorder %s1165_s10, 1 }
  0x2e   : > { %s1301_s27 = smov (!%p150_p2, %s149_s27), 5  ;;  %1008 = vmatprep.subr.bf16.mxu0 %v1141_v7  ;;  %1026 = vmatprep.subr.bf16.mxu1 %v1141_v7  ;;  %v1027_v1 = vpack.c.bf16 %v165_v62, %v164_v61  ;;  %v167_v2 = vld [vmem:[#allocation2 + $0x48] sm:$0xff]  ;;  %v170_v11 = vld [vmem:[#allocation2 + $0x60] sm:$0xff]  ;;  %vm810_vm4 = vcmask 15360  }
  0x2f   : > { %s884_s28 = sshll.u32 %s1301_s27, 3  ;;  %v182_v13 = vsub.s32 0, %v1233_v12  ;;  %v1030_v3 = vpack.c.bf16 %v167_v2, %v166_v63  ;;  %s1303_s10 = smov (!%p155_p3, %s1165_s10), 1 }
  0x30   : > { %s1214_s3 = scalar_lea.vmem %s1290_s0, %s884_s28  ;;  %s885_s6 = sshll.u32 %s1303_s10, 3 }
  0x31   : > { %v177_v4 = vld [vmem:[%s1214_s3] sm:$0xff]  ;;  %v178_v9 = vld [vmem:[%s1214_s3 + $0x8] sm:$0xff]  ;;  %v183_v15 = vrot.slane %v1236_v14, %v182_v13  ;;  %v179_v42 = vld [vmem:[%s1214_s3 + $0x10] sm:$0xff]  ;;  %s158_s11 = scalar_lea.vmem %s1292_s2, %s885_s6 }
  0x32   : > { %934 = vmatmul.mubr.msk.f32.vlgmr.msra.gmra.mrb[0].mxu0 %vm184_vm2, %v177_v4  ;;  %940 = vmatmul.mubr.msk.f32.vlgmr.msra.gmra.mrb[0].mxu1 %vm184_vm2, %v179_v42 }
  0x33   : > { %1010 = vmatpush3.bf16.msra.mxu0 %v1009_v5  ;;  %936 = vmatprep.mubr.msk.f32.mxu0 %vm1140_vm0, %v1139_v0 }
  0x34   : > { %1011 = vmatprep.subr.bf16.mxu0 %v1141_v7  ;;  %983 = vmatprep.mubr.msk.f32.mxu1 %vm1140_vm0, %v1139_v0 }
  0x35   : > { %1028 = vmatpush3.bf16.msra.mxu1 %v1027_v1 }
  0x36   : > { %937 = vmatmul.mubr.msk.f32.gmra.mrb[2].mxu0 %vm184_vm2, %v178_v9  ;;  %1029 = vmatprep.subr.bf16.mxu1 %v1141_v7  ;;  %v168_v9 = vld [vmem:[#allocation2 + $0x50] sm:$0xff] }
  0x37   : > { %1013 = vmatpush3.bf16.msra.mxu0 %v1012_v10  ;;  %950 = vmatprep.mubr.msk.f32.mxu0 %vm1140_vm0, %v1139_v0 }
  0x38   : > { %1014 = vmatprep.subr.bf16.mxu0 %v1141_v7 }
  0x39   : > { %1031 = vmatpush3.bf16.msra.mxu1 %v1030_v3 }
  0x3a   : > { %951 = vmatmul.mubr.f32.vlgmr.msra.gmra.mrb[0].mxu0 %v1139_v0  ;;  %1032 = vmatprep.subr.bf16.mxu1 %v1141_v7 }
  0x3b   : > { %1016 = vmatpush3.bf16.msra.mxu0 %v1009_v5  ;;  %961 = vmatprep.mubr.msk.f32.mxu0 %vm1140_vm0, %v1139_v0 }
  0x3c   : > { %1017 = vmatprep.subr.bf16.mxu0 %v1141_v7 }
  0x3f   : > { %1019 = vmatpush3.bf16.msra.mxu0 %v1012_v10 }
  0x40   : > { %1020 = vmatprep.subr.bf16.mxu0 %v1141_v7 }
 0x105   : > { %v274_v46 = vpop.f32.mrb[0].mxu1 }
 0x106   : > { %v941_v47 = vpop.f32.mrb[1].mxu1  ;;  %v275_v49 = vadd.f32 %v274_v46, %v183_v15 }
 0x10d   : > { %v348_v16 = vpop.f32.mrb[0].mxu0 }
 0x10e   : > { %v1046_v17 = vadd.f32 %v348_v16, %v183_v15  ;;  %v952_v18 = vpop.f32.mrb[1].mxu0 }
 0x110   : > { %1080 = vtanh.f32 %v1046_v17  ;;  %v567_v17 = vsub.s32 1, %v1233_v12 }
 0x112   : > { %v568_v18 = vrot.slane %v1236_v14, %v567_v17 }
 0x11a   : > { %v1081_v19 = vpop.eup %1080 }
 0x11b   : > { %358 = vrot.lane.b32.xlu0 %v1081_v19, %s1142_s4  ;;  %v354_v20 = vmul.f32 0.5, %v1081_v19 }
 0x11d   : > { %v355_v21 = vadd.f32 0.5, %v354_v20 }
 0x11f   : > { %v356_v24 = vmul.f32 0.0, %v355_v21 }
 0x18d   : > { %v359_v22 = vpop.permute.xlu0 %358 }
 0x18e   : > { %v361_v23 = vmul.f32 %v359_v22, %v355_v21 }
 0x190   : > { %363 = vrot.lane.b32.xlu0 %v361_v23, %s1143_s5  ;;  %v172_v23 = vld [vmem:[#allocation2 + $0x70] sm:$0xff] }
 0x202   : > { %v364_v25 = vpop.permute.xlu0 %363 }
 0x203   : > { %v366_v26 = vadd.f32 %v364_v25, %v356_v24  ;;  %v173_v24 = vld [vmem:[#allocation2 + $0x78] sm:$0xff]  ;;  %v174_v25 = vld [vmem:[#allocation2 + $0x80] sm:$0xff] }
 0x205   : > { %1082 = vtanh.f32 %v366_v26 }
 0x20f   : > { %v1083_v27 = vpop.eup %1082 }
 0x210   : > { %369 = vrot.lane.b32.xlu1 %v1083_v27, %s1142_s4  ;;  %v175_v27 = vld [vmem:[#allocation2 + $0x88] sm:$0xff] }
 0x282   : > { %v370_v28 = vpop.permute.xlu1 %369 }
 0x283   : > { %v372_v29 = vmul.f32 %v370_v28, %v355_v21  ;;  %v1042_v28 = vpack.c.bf16 %v175_v27, %v174_v25 }
 0x285   : > { %374 = vrot.lane.b32.xlu1 %v372_v29, %s1143_s5  ;;  %v647_v29 = vsub.s32 2, %v1233_v12 }
 0x2f7   : > { %v375_v30 = vpop.permute.xlu1 %374 }
 0x2f8   : > { %962 = vmatmul.mubr.msk.f32.vlgmr.msra.gmra.mrb[2].mxu0 %vm278_vm3, %v375_v30  ;;  %v648_v30 = vrot.slane %v1236_v14, %v647_v29 }
 0x2f9   : > { %1022 = vmatpush3.bf16.msra.mxu0 %v1009_v5  ;;  %972 = vmatprep.mubr.msk.f32.mxu0 %vm1140_vm0, %v1139_v0 }
 0x2fa   : > { %1023 = vmatprep.subr.bf16.mxu0 %v1141_v7 }
 0x2fd   : > { %1025 = vmatpush3.bf16.msra.mxu0 %v1012_v10  ;;  %v169_v10 = vld [vmem:[#allocation2 + $0x58] sm:$0xff] }
 0x2fe   : > { %v1033_v13 = vpack.c.bf16 %v169_v10, %v168_v9 }
 0x3cb   : > { %v444_v31 = vpop.f32.mrb[2].mxu0 }
 0x3cc   : > { %v1047_v32 = vadd.f32 %v444_v31, %v183_v15  ;;  %v963_v33 = vpop.f32.mrb[3].mxu0  ;;  %v171_v15 = vld [vmem:[#allocation2 + $0x68] sm:$0xff] }
 0x3cd   : > { %v1036_v16 = vpack.c.bf16 %v171_v15, %v170_v11 }
 0x3ce   : > { %1084 = vtanh.f32 %v1047_v32 }
 0x3d8   : > { %v1085_v34 = vpop.eup %1084 }
 0x3d9   : > { %454 = vrot.lane.b32.xlu0 %v1085_v34, %s1142_s4  ;;  %v450_v35 = vmul.f32 0.5, %v1085_v34  ;;  %v725_v34 = vsub.s32 3, %v1233_v12 }
 0x3db   : > { %v451_v36 = vadd.f32 0.5, %v450_v35  ;;  %v802_v35 = vsub.s32 4, %v1233_v12 }
 0x3dd   : > { %v452_v39 = vmul.f32 %v451_v36, %v366_v26  ;;  %v1039_v26 = vpack.c.bf16 %v173_v24, %v172_v23 }
 0x44b   : > { %v455_v37 = vpop.permute.xlu0 %454 }
 0x44c   : > { %v457_v38 = vmul.f32 %v455_v37, %v451_v36  ;;  %v803_v37 = vrot.slane %v1236_v14, %v802_v35 }
 0x44e   : > { %459 = vrot.lane.b32.xlu1 %v457_v38, %s1143_s5 }
 0x4c0   : > { %v460_v40 = vpop.permute.xlu1 %459 }
 0x4c1   : > { %v462_v41 = vadd.f32 %v460_v40, %v452_v39 }
 0x4c3   : > { %1086 = vtanh.f32 %v462_v41 }
 0x4cd   : > { %v1087_v43 = vpop.eup %1086 }
 0x4ce   : > { %465 = vrot.lane.b32.xlu0 %v1087_v43, %s1142_s4 }
 0x540   : > { %v466_v44 = vpop.permute.xlu0 %465 }
 0x541   : > { %v468_v45 = vmul.f32 %v466_v44, %v451_v36  ;;  %v807_v36 = vsub.s32 5, %v1233_v12 }
 0x543   : > { %470 = vrot.lane.b32.xlu1 %v468_v45, %s1143_s5  ;;  %v808_v40 = vrot.slane %v1236_v14, %v807_v36 }
 0x5b5   : > { %v471_v48 = vpop.permute.xlu1 %470 }
 0x5b6   : > { %973 = vmatmul.mubr.msk.f32.vlgmr.msra.gmra.mrb[4].mxu0 %vm278_vm3, %v471_v48 }
 0x689   : > { %v540_v50 = vpop.f32.mrb[4].mxu0 }
 0x68a   : > { %v544_v51 = vadd.f32 %v540_v50, %v275_v49  ;;  %v974_v52 = vpop.f32.mrb[5].mxu0 }
 0x68c   : > { %1088 = vtanh.f32 %v544_v51 }
 0x696   : > { %v1089_v53 = vpop.eup %1088 }
 0x697   : > { %550 = vrot.lane.b32.xlu0 %v1089_v53, %s1142_s4  ;;  %v546_v54 = vmul.f32 0.5, %v1089_v53 }
 0x699   : > { %v547_v55 = vadd.f32 0.5, %v546_v54 }
 0x69b   : > { %v548_v58 = vmul.f32 %v547_v55, %v462_v41 }
 0x709   : > { %v551_v56 = vpop.permute.xlu0 %550 }
 0x70a   : > { %v553_v57 = vmul.f32 %v551_v56, %v547_v55 }
 0x70c   : > { %555 = vrot.lane.b32.xlu1 %v553_v57, %s1143_s5 }
 0x77e   : > { %v556_v59 = vpop.permute.xlu1 %555 }
 0x77f   : > { %v558_v60 = vadd.f32 %v556_v59, %v548_v58 }
 0x781   : > { %1090 = vtanh.f32 %v558_v60 }
 0x78b   : > { %v1091_v4 = vpop.eup %1090 }
 0x78c   : > { %561 = vrot.lane.b32.xlu0 %v1091_v4, %s1142_s4 }
 0x7fe   : > { %v562_v5 = vpop.permute.xlu0 %561 }
 0x7ff   : > { %v564_v6 = vmul.f32 %v562_v5, %v547_v55 }
 0x801   : > { %570 = vrot.lane.b32.xlu1 %v564_v6, %s1143_s5 }
 0x873   : > { %v571_v8 = vpop.permute.xlu1 %570 }
 0x874   : > { %984 = vmatmul.mubr.msk.f32.vlgmr.msra.gmra.mrb[2].mxu1 %vm278_vm3, %v571_v8 }
 0x875   : > { %994 = vmatprep.mubr.msk.f32.mxu1 %vm1140_vm0, %v1139_v0  ;;  %1034 = vmatpush3.bf16.msra.mxu1 %v1033_v13 }
 0x876   : > { %1035 = vmatprep.subr.bf16.mxu1 %v1141_v7 }
 0x879   : > { %1037 = vmatpush3.bf16.msra.mxu1 %v1036_v16 }
 0x87a   : > { %1038 = vmatprep.subr.bf16.mxu1 %v1141_v7 }
 0x947   : > { %v640_v19 = vpop.f32.mrb[2].mxu1 }
 0x948   : > { %v641_v20 = vadd.f32 %v640_v19, %v568_v18  ;;  %v985_v21 = vpop.f32.mrb[3].mxu1 }
 0x94a   : > { %1092 = vtanh.f32 %v641_v20 }
 0x954   : > { %v1093_v22 = vpop.eup %1092 }
 0x955   : > { %995 = vmatmul.mubr.msk.f32.vlgmr.msra.gmra.mrb[4].mxu1 %vm278_vm3, %v1093_v22 }
 0x956   : > { %1005 = vmatprep.mubr.msk.f32.mxu1 %vm1140_vm0, %v1139_v0  ;;  %1040 = vmatpush3.bf16.msra.mxu1 %v1039_v26 }
 0x957   : > { %1041 = vmatprep.subr.bf16.mxu1 %v1141_v7  ;;  %v726_v7 = vrot.slane %v1236_v14, %v725_v34 }
 0x95a   : > { %1043 = vmatpush3.bf16.msra.mxu1 %v1042_v28 }
 0xa28   : > { %v718_v31 = vpop.f32.mrb[4].mxu1 }
 0xa29   : > { %v719_v32 = vadd.f32 %v718_v31, %v648_v30  ;;  %v996_v33 = vpop.f32.mrb[5].mxu1 }
 0xa2b   : > { %1094 = vtanh.f32 %v719_v32 }
 0xa35   : > { %v1095_v0 = vpop.eup %1094 }
 0xa36   : > { %1006 = vmatmul.mubr.msk.f32.vlgmr.msra.gmra.mrb[6].mxu1 %vm278_vm3, %v1095_v0 }
 0xb09   : > { %v796_v38 = vpop.f32.mrb[6].mxu1 }
 0xb0a   : > { %v797_v39 = vadd.f32 %v796_v38, %v726_v7  ;;  %v1007_v41 = vpop.f32.mrb[7].mxu1 }
 0xb0c   : > { %v804_v42 = vmul.f32 %v803_v37, %v797_v39 }
 0xb0e   : > { %v809_v43 = vadd.f32 %v808_v40, %v804_v42 }
 0xb10   : > { %811 = vst.msk [vmem:[%s158_s11] sm:$0xff] %vm810_vm4, %v809_v43 }
 0xb11 PF: > { %s13_s9 = sadd.s32 1, %s1134_s9  }
 0xb12   : > { %p10_p5 = scmp.ge.s32.totalorder %s13_s9, 4  }
 0xb14   :  { %12 = sbr.rel (!%p10_p5) target bundleno = 1 (0x1), region = 63 }
 0xb1b   :  { %831 = vsyncpa [#allocation3], 1 }
 0xb1c   :  { %833 = vsyncpa [#allocation3 + $0x1], 1 }

</bundles_post_ra>
